<compile_context>
chip_gen: v5e
topology: v5e:2x2
jax: 0.10.0
libtpu: 0.0.40
codegen_flags: <defaults>
</compile_context>

<pallas_src>
import functools

import jax
import jax.numpy as jnp
from jax import lax
from jax.experimental import pallas as pl
from jax.experimental.pallas import tpu as pltpu

IGNORE_INDEX = -100
NUM_SPLITS = 2                      # leading 'parallel' grid axis (2 TCs on v7x)
VMEM_LIMIT_BYTES = 48 * 1024 * 1024  # explicit scoped-VMEM ceiling; safe on v5e/v6e/v7x


def _choose_tile_n(c, itemsize):
    """Rows per grid step: as large as keeps one logits buffer around ~8 MiB.

    VMEM lays out a (TN, C) block with the lane dim padded to a multiple of 128,
    so budget with the padded lane count; double-buffering doubles the footprint
    and we stay far below v7x's 64 MiB physical VMEM.
    """
    c_lanes = ((max(int(c), 1) + 127) // 128) * 128
    target_bytes = 8 * 1024 * 1024
    tn = target_bytes // (c_lanes * max(int(itemsize), 1))
    tn = max(8, min(2048, (tn // 8) * 8))
    return int(tn)


def _ce_kernel(w_ref, x_ref, t_ref, nll_ref, den_ref):
    """Weighted cross-entropy with ignore_index; per-row accumulation.

    w_ref:   (1, C)   f32   class weights (resident, broadcast to every row)
    x_ref:   (TN, C)  any   logits tile (cast to f32 in-kernel)
    t_ref:   (TN, 1)  i32   target class ids (-100 => ignore)
    nll_ref: (TN, 1)  f32   per-row weighted NLL, accumulated across the inner axis
    den_ref: (TN, 1)  f32   per-row weight (0 for ignored rows), accumulated likewise
    """
    i = pl.program_id(1)

    @pl.when(i == 0)
    def _():
        # output blocks stay VMEM-resident across the inner ('arbitrary') axis;
        # they are NOT guaranteed zero, so zero them per split.
        nll_ref[...] = jnp.zeros_like(nll_ref)
        den_ref[...] = jnp.zeros_like(den_ref)

    x = x_ref[...].astype(jnp.float32)          # (TN, C)
    t = t_ref[...]                              # (TN, 1) int32
    w = w_ref[...].astype(jnp.float32)          # (1, C)

    # numerically stable log-sum-exp per row
    m = jnp.max(x, axis=-1, keepdims=True)                                # (TN, 1)
    lse = m + jnp.log(jnp.sum(jnp.exp(x - m), axis=-1, keepdims=True))    # (TN, 1)

    # gather logit & weight at the target class via one-hot compare
    col = lax.broadcasted_iota(jnp.int32, x.shape, 1)                     # (TN, C)
    onehot = col == t                                                     # (TN, C)
    logit_y = jnp.sum(jnp.where(onehot, x, 0.0), axis=-1, keepdims=True)  # (TN, 1)
    w_y = jnp.sum(jnp.where(onehot, w, 0.0), axis=-1, keepdims=True)      # (TN, 1)

    valid = t != IGNORE_INDEX
    # pure VPU elementwise accumulation into the resident output blocks; the
    # single global cross-lane reduce + divide happens once, in the wrapper.
    nll_ref[...] += jnp.where(valid, w_y * (lse - logit_y), 0.0)
    den_ref[...] += jnp.where(valid, w_y, 0.0)


@functools.partial(jax.jit, static_argnames=("tile_n",))
def _ce_pallas(x, t, w, *, tile_n):
    """x: (Npad, C) logits, t: (Npad, 1) i32, w: (1, C) f32 -> scalar f32 loss."""
    n_pad, c = x.shape
    rows_per_split = n_pad // NUM_SPLITS
    tiles_per_split = rows_per_split // tile_n
    grid = (NUM_SPLITS, tiles_per_split)

    def row_map(g, i):
        return (g * tiles_per_split + i, 0)

    cost = pl.CostEstimate(
        flops=int(6 * n_pad * c),
        transcendentals=int(n_pad * (c + 1)),
        bytes_accessed=int(n_pad * c * x.dtype.itemsize + n_pad * 4 + c * 4),
    )

    nll_parts, den_parts = pl.pallas_call(
        _ce_kernel,
        out_shape=(
            jax.ShapeDtypeStruct((NUM_SPLITS * tile_n, 1), jnp.float32),
            jax.ShapeDtypeStruct((NUM_SPLITS * tile_n, 1), jnp.float32),
        ),
        grid_spec=pltpu.PrefetchScalarGridSpec(
            num_scalar_prefetch=0,
            grid=grid,
            in_specs=[
                pl.BlockSpec((1, c), lambda g, i: (0, 0)),        # class weights (resident)
                pl.BlockSpec((tile_n, c), row_map),               # logits tile
                pl.BlockSpec((tile_n, 1), row_map),               # targets tile
            ],
            out_specs=[
                pl.BlockSpec((tile_n, 1), lambda g, i: (g, 0)),   # per-split partial weighted NLL
                pl.BlockSpec((tile_n, 1), lambda g, i: (g, 0)),   # per-split partial weight sum
            ],
        ),
        compiler_params=pltpu.CompilerParams(
            dimension_semantics=("parallel", "arbitrary"),
            vmem_limit_bytes=VMEM_LIMIT_BYTES,
        ),
        cost_estimate=cost,
    )(w, x, t)

    # reduction='mean' with weights => weighted sum / sum of weights.
    # (If every target is ignore_index this is 0/0 = NaN, matching PyTorch.)
    return jnp.sum(nll_parts) / jnp.sum(den_parts)


def class_loss(class_output, class_target, class_weights=None):
    """Equivalent of ClassLoss.forward: lists of (Ni, C) logits and (Ni,) int targets."""
    sizes = [int(o.shape[0]) for o in class_output]
    total = sum(sizes)
    if total == 0:
        dtype = class_output[0].dtype if len(class_output) else jnp.float32
        return jnp.zeros((), dtype=dtype)

    # glue: concatenate list inputs; keep the source dtype (bf16 logits stay bf16
    # on the HBM->VMEM stream; the upcast to f32 happens inside the kernel).
    x = jnp.concatenate(class_output, axis=0)                              # (N, C)
    t = jnp.concatenate(class_target, axis=0).astype(jnp.int32)            # (N,)
    n, c = x.shape

    if class_weights is None:
        w = jnp.ones((1, c), dtype=jnp.float32)
    else:
        w = jnp.asarray(class_weights, dtype=jnp.float32).reshape(1, c)

    # tile sizing: big tiles for big N, but never bigger than the (split) input
    tile_n = min(
        _choose_tile_n(c, x.dtype.itemsize),
        ((n + NUM_SPLITS - 1) // NUM_SPLITS + 7) // 8 * 8,
    )
    tile_n = max(tile_n, 8)

    # pad rows to a multiple of NUM_SPLITS * tile_n; padded rows get ignore_index
    # so they contribute nothing to either accumulator.
    chunk = NUM_SPLITS * tile_n
    n_pad = ((n + chunk - 1) // chunk) * chunk
    if n_pad != n:
        x = jnp.concatenate([x, jnp.zeros((n_pad - n, c), x.dtype)], axis=0)
        t = jnp.concatenate(
            [t, jnp.full((n_pad - n,), IGNORE_INDEX, jnp.int32)], axis=0)
    t2 = t.reshape(n_pad, 1)

    return _ce_pallas(x, t2, w, tile_n=tile_n)


def _reference_loss(class_output, class_target, class_weights=None):
    """Pure-JAX reference of torch.nn.CrossEntropyLoss(weight, ignore_index=-100, 'mean')."""
    x = jnp.concatenate(class_output, axis=0).astype(jnp.float32)
    t = jnp.concatenate(class_target, axis=0).astype(jnp.int32)
    c = x.shape[-1]
    w = jnp.ones((c,), jnp.float32) if class_weights is None else jnp.asarray(
        class_weights, jnp.float32)
    valid = t != IGNORE_INDEX
    t_safe = jnp.where(valid, t, 0)
    logp = jax.nn.log_softmax(x, axis=-1)
    nll = -jnp.take_along_axis(logp, t_safe[:, None], axis=-1)[:, 0]
    wy = w[t_safe]
    num = jnp.sum(jnp.where(valid, wy * nll, 0.0))
    den = jnp.sum(jnp.where(valid, wy, 0.0))
    return num / den


if __name__ == "__main__":
    key = jax.random.PRNGKey(0)
    k1, k2, k3, k4 = jax.random.split(key, 4)

    C = 8  # number of classes
    # list-of-tensors inputs, mirroring the torch module's forward signature
    class_output = [
        jax.random.normal(k1, (3, C), jnp.float32),
        jax.random.normal(k2, (5, C), jnp.float32),
    ]
    class_target = [
        jax.random.randint(k3, (3,), 0, C, jnp.int32),
        jax.random.randint(k4, (5,), 0, C, jnp.int32),
    ]
    # sprinkle an ignore_index entry
    class_target[1] = class_target[1].at[2].set(IGNORE_INDEX)

    # deterministic "class_weights" parameter (shape (C,), as in CrossEntropyLoss(weight=...))
    class_weights = 0.5 + jnp.arange(C, dtype=jnp.float32) / C

    loss = class_loss(class_output, class_target, class_weights)
    loss = jax.block_until_ready(loss)

    ref = _reference_loss(class_output, class_target, class_weights)
    assert jnp.allclose(loss, ref, rtol=1e-5, atol=1e-5), (loss, ref)

    # unweighted path as well
    loss_u = jax.block_until_ready(class_loss(class_output, class_target))
    ref_u = _reference_loss(class_output, class_target)
    assert jnp.allclose(loss_u, ref_u, rtol=1e-5, atol=1e-5), (loss_u, ref_u)

    # empty-input branch of the module
    empty = class_loss([jnp.zeros((0, C), jnp.float32)], [jnp.zeros((0,), jnp.int32)])
    assert float(empty) == 0.0

    print("KERNEL_OK")
</pallas_src>

<mosaic_0001>
module attributes {stable_mosaic.version = 11 : i64} {
  func.func @_ce_kernel(%arg0: i32, %arg1: i32, %arg2: memref<1x8xf32, #tpu.memory_space<vmem>>, %arg3: memref<8x8xf32, #tpu.memory_space<vmem>>, %arg4: memref<8x1xi32, #tpu.memory_space<vmem>>, %arg5: memref<8x1xf32, #tpu.memory_space<vmem>>, %arg6: memref<8x1xf32, #tpu.memory_space<vmem>>) attributes {dimension_semantics = [#tpu.dimension_semantics<parallel>, #tpu.dimension_semantics<arbitrary>], iteration_bounds = array<i64: 2, 1>, scalar_prefetch = 0 : i64, scratch_operands = 0 : i64, tpu.core_type = #tpu.core_type<tc>, window_params = [{pipeline_mode = #tpu.pipeline_mode<synchronous>, transform_indices = @transform_0, window_bounds = array<i64: 1, 8>}, {transform_indices = @transform_1, window_bounds = array<i64: 8, 8>}, {transform_indices = @transform_2, window_bounds = array<i64: 8, 1>}, {transform_indices = @transform_3, window_bounds = array<i64: 8, 1>}, {transform_indices = @transform_4, window_bounds = array<i64: 8, 1>}]} {
    %c0_i32 = arith.constant 0 : i32
    %0 = arith.cmpi eq, %arg1, %c0_i32 : i32
    %1 = arith.extui %0 : i1 to i32
    %c0_i32_0 = arith.constant 0 : i32
    %2 = arith.cmpi ne, %1, %c0_i32_0 : i32
    scf.if %2 {
      %cst_21 = arith.constant 0.000000e+00 : f32
      %42 = vector.broadcast %cst_21 : f32 to vector<8x1xf32>
      %c0_22 = arith.constant 0 : index
      %c0_23 = arith.constant 0 : index
      %43 = vector.load %arg5[%c0_22, %c0_23] : memref<8x1xf32, #tpu.memory_space<vmem>>, vector<8x1xf32>
      tpu.vector_store %arg5[%c0_22, %c0_23], %42 {strides = array<i32>} : memref<8x1xf32, #tpu.memory_space<vmem>>, vector<8x1xf32>,
      %cst_24 = arith.constant 0.000000e+00 : f32
      %44 = vector.broadcast %cst_24 : f32 to vector<8x1xf32>
      %c0_25 = arith.constant 0 : index
      %c0_26 = arith.constant 0 : index
      %45 = vector.load %arg6[%c0_25, %c0_26] : memref<8x1xf32, #tpu.memory_space<vmem>>, vector<8x1xf32>
      tpu.vector_store %arg6[%c0_25, %c0_26], %44 {strides = array<i32>} : memref<8x1xf32, #tpu.memory_space<vmem>>, vector<8x1xf32>,
    } else {
    }
    %c0 = arith.constant 0 : index
    %c0_1 = arith.constant 0 : index
    %3 = vector.load %arg3[%c0, %c0_1] : memref<8x8xf32, #tpu.memory_space<vmem>>, vector<8x8xf32>
    %c0_2 = arith.constant 0 : index
    %c0_3 = arith.constant 0 : index
    %4 = vector.load %arg4[%c0_2, %c0_3] : memref<8x1xi32, #tpu.memory_space<vmem>>, vector<8x1xi32>
    %c0_4 = arith.constant 0 : index
    %c0_5 = arith.constant 0 : index
    %5 = vector.load %arg2[%c0_4, %c0_5] : memref<1x8xf32, #tpu.memory_space<vmem>>, vector<1x8xf32>
    %cst = arith.constant dense<0xFF800000> : vector<8xf32>
    %6 = vector.multi_reduction <maximumf>, %3, %cst [1] : vector<8x8xf32> to vector<8xf32>
    %7 = vector.shape_cast %6 : vector<8xf32> to vector<8x1xf32>
    %8 = vector.broadcast %7 : vector<8x1xf32> to vector<8x8xf32>
    %9 = arith.subf %3, %8 : vector<8x8xf32>
    %10 = math.exp %9 : vector<8x8xf32>
    %cst_6 = arith.constant dense<0.000000e+00> : vector<8xf32>
    %11 = vector.multi_reduction <add>, %10, %cst_6 [1] : vector<8x8xf32> to vector<8xf32>
    %12 = vector.shape_cast %11 : vector<8xf32> to vector<8x1xf32>
    %13 = math.log %12 : vector<8x1xf32>
    %14 = arith.addf %7, %13 : vector<8x1xf32>
    %15 = tpu.iota {dimensions = array<i32: 1>} : vector<8x8xi32>
    %16 = vector.broadcast %4 : vector<8x1xi32> to vector<8x8xi32>
    %17 = arith.cmpi eq, %15, %16 : vector<8x8xi32>
    %cst_7 = arith.constant 0.000000e+00 : f32
    %18 = vector.broadcast %cst_7 : f32 to vector<8x8xf32>
    %19 = arith.select %17, %3, %18 : vector<8x8xi1>, vector<8x8xf32>
    %cst_8 = arith.constant dense<0.000000e+00> : vector<8xf32>
    %20 = vector.multi_reduction <add>, %19, %cst_8 [1] : vector<8x8xf32> to vector<8xf32>
    %21 = vector.shape_cast %20 : vector<8xf32> to vector<8x1xf32>
    %cst_9 = arith.constant 0.000000e+00 : f32
    %22 = vector.shape_cast %5 : vector<1x8xf32> to vector<1x8xf32>
    %23 = vector.broadcast %22 : vector<1x8xf32> to vector<8x8xf32>
    %24 = vector.broadcast %cst_9 : f32 to vector<8x8xf32>
    %25 = arith.select %17, %23, %24 : vector<8x8xi1>, vector<8x8xf32>
    %cst_10 = arith.constant dense<0.000000e+00> : vector<8xf32>
    %26 = vector.multi_reduction <add>, %25, %cst_10 [1] : vector<8x8xf32> to vector<8xf32>
    %27 = vector.shape_cast %26 : vector<8xf32> to vector<8x1xf32>
    %c-100_i32 = arith.constant -100 : i32
    %28 = vector.broadcast %c-100_i32 : i32 to vector<8x1xi32>
    %29 = arith.cmpi ne, %4, %28 : vector<8x1xi32>
    %c0_11 = arith.constant 0 : index
    %c0_12 = arith.constant 0 : index
    %30 = vector.load %arg5[%c0_11, %c0_12] : memref<8x1xf32, #tpu.memory_space<vmem>>, vector<8x1xf32>
    %31 = arith.subf %14, %21 : vector<8x1xf32>
    %32 = arith.mulf %27, %31 : vector<8x1xf32>
    %cst_13 = arith.constant 0.000000e+00 : f32
    %33 = vector.broadcast %cst_13 : f32 to vector<8x1xf32>
    %34 = arith.select %29, %32, %33 : vector<8x1xi1>, vector<8x1xf32>
    %35 = arith.addf %30, %34 : vector<8x1xf32>
    %c0_14 = arith.constant 0 : index
    %c0_15 = arith.constant 0 : index
    %36 = vector.load %arg5[%c0_14, %c0_15] : memref<8x1xf32, #tpu.memory_space<vmem>>, vector<8x1xf32>
    tpu.vector_store %arg5[%c0_14, %c0_15], %35 {strides = array<i32>} : memref<8x1xf32, #tpu.memory_space<vmem>>, vector<8x1xf32>,
    %c0_16 = arith.constant 0 : index
    %c0_17 = arith.constant 0 : index
    %37 = vector.load %arg6[%c0_16, %c0_17] : memref<8x1xf32, #tpu.memory_space<vmem>>, vector<8x1xf32>
    %cst_18 = arith.constant 0.000000e+00 : f32
    %38 = vector.broadcast %cst_18 : f32 to vector<8x1xf32>
    %39 = arith.select %29, %27, %38 : vector<8x1xi1>, vector<8x1xf32>
    %40 = arith.addf %37, %39 : vector<8x1xf32>
    %c0_19 = arith.constant 0 : index
    %c0_20 = arith.constant 0 : index
    %41 = vector.load %arg6[%c0_19, %c0_20] : memref<8x1xf32, #tpu.memory_space<vmem>>, vector<8x1xf32>
    tpu.vector_store %arg6[%c0_19, %c0_20], %40 {strides = array<i32>} : memref<8x1xf32, #tpu.memory_space<vmem>>, vector<8x1xf32>,
    return
  }
  func.func @transform_0(%arg0: i32, %arg1: i32) -> (i32, i32) {
    %c0_i32 = arith.constant 0 : i32
    %c0_i32_0 = arith.constant 0 : i32
    %c0_i32_1 = arith.constant 0 : i32
    return %c0_i32, %c0_i32_0 : i32, i32
  }
  func.func @transform_1(%arg0: i32, %arg1: i32) -> (i32, i32) {
    %c1_i32 = arith.constant 1 : i32
    %0 = arith.muli %arg0, %c1_i32 : i32
    %1 = arith.addi %0, %arg1 : i32
    %c0_i32 = arith.constant 0 : i32
    %c0_i32_0 = arith.constant 0 : i32
    return %1, %c0_i32 : i32, i32
  }
  func.func @transform_2(%arg0: i32, %arg1: i32) -> (i32, i32) {
    %c1_i32 = arith.constant 1 : i32
    %0 = arith.muli %arg0, %c1_i32 : i32
    %1 = arith.addi %0, %arg1 : i32
    %c0_i32 = arith.constant 0 : i32
    %c0_i32_0 = arith.constant 0 : i32
    return %1, %c0_i32 : i32, i32
  }
  func.func @transform_3(%arg0: i32, %arg1: i32) -> (i32, i32) {
    %c0_i32 = arith.constant 0 : i32
    %c0_i32_0 = arith.constant 0 : i32
    return %arg0, %c0_i32 : i32, i32
  }
  func.func @transform_4(%arg0: i32, %arg1: i32) -> (i32, i32) {
    %c0_i32 = arith.constant 0 : i32
    %c0_i32_0 = arith.constant 0 : i32
    return %arg0, %c0_i32 : i32, i32
  }
}

</mosaic_0001>

<bundles_post_ra>
// kernel: _ce_pallas.1
= control target key start
LH: loop header
LB: loop body
LE: loop exit
PB: predicated region body
PF: predicated region fallthrough
CT: control target
= control target key end

     0   :  { %s497_s15 = smov 0   ;;  %s499_s16 = smov 0   ;;  %s547_s0 = inlined_call_operand.vmem [shape: f32[1,8], index: 0, kind: input, shape index: {}]   ;;  %s548_s1 = inlined_call_operand.vmem [shape: f32[16,8], index: 1, kind: input, shape index: {}]   ;;  %s549_s2 = inlined_call_operand.vmem [shape: s32[16,1], index: 2, kind: input, shape index: {}]   ;;  %s550_s3 = inlined_call_operand.vmem [shape: f32[16,1], index: 3, kind: output, shape index: {0}]   ;;  %s551_s4 = inlined_call_operand.vmem [shape: f32[16,1], index: 4, kind: output, shape index: {1}]  }
   0x1   :  { %s501_s17 = smov 0  }
   0x2 LB: > { %s27_s18 = sadd.s32 1, %s464_s16  ;;  %p407_p0 = scmp.ge.s32.totalorder %s468_s17, 1  ;;  %s468_s17 = sphi %s501_s17, %s15_s17   ;;  %s464_s16 = sphi %s499_s16, %s553_s16   ;;  %s460_s15 = sphi %s497_s15, %s552_s15  }
   0x3   : > { %p29_p1 = scmp.ge.s32.totalorder %s27_s18, 2  ;;  %p193_p2 = scmp.lt.s32.totalorder %s468_s17, 3 }
   0x5   : > { %s555_s18 = smov (%p29_p1, %s27_s18), 0  ;;  %p194_p3 = pnand %p407_p0, %p193_p2 }
   0x6   : > { %p228_p4 = scmp.lt.s32.totalorder (!%p194_p3), %s460_s15, 1 }
   0x7   : > { %197 = sbr.rel (%p194_p3) target bundleno = 280 (0x118), region = 32 }
   0xc   : > { %v470_v0 = vmov 0   ;;  %s557_s15 = smov (!%p228_p4, %s460_s15), 1  ;;  %vm257_vm0 = vcmask 64512   ;;  %v270_v9 = vlaneseq  ;;  %v441_v11 = vld [vmem:[%s547_s0] ss:$0 sm:$0xff]  ;;  %vm251_vm2 = vcmask 7168  }
   0xd   : > { %440 = vset.pattern.permute.xlu0 %v470_v0  ;;  %s408_s19 = sshll.u32 %s557_s15, 3  ;;  %v471_v17 = vmov 0.0  }
   0xe   : > { %s231_s22 = scalar_lea.vmem %s548_s1, %s408_s19  ;;  %s237_s25 = scalar_lea.vmem %s549_s2, %s408_s19  ;;  %v271_v10 = vand.u32 127, %v270_v9 }
   0xf   : > { %v254_v1 = vld [vmem:[%s231_s22] sm:$0xff]  ;;  %s246_s30 = scalar_lea.vmem %s551_s4, %s408_s19  ;;  %s242_s7 = scalar_lea.vmem %s550_s3, %s408_s19 }
  0x10   : > { %v258_v2 = vsel %vm257_vm0, %v254_v1, -inf  ;;  %v255_v3 = vld [vmem:[%s237_s25] sm:$0xff]  ;;  %253 = vst.msk [vmem:[%s246_s30] sm:$0xff] %vm251_vm2, %v471_v17 }
  0x11   : > { %259 = vmax.xlane.f32.xlu0 %v258_v2  ;;  %252 = vst.msk [vmem:[%s242_s7] sm:$0xff] %vm251_vm2, %v471_v17  ;;  %vm287_vm3 = vcmp.ne.s32.totalorder %v255_v3, 4294967196 }
  0x17   : > { %v295_v21 = vld [vmem:[%s246_s30] sm:$0xff] }
  0x18   : > { %v288_v28 = vld [vmem:[%s242_s7] sm:$0xff] }
  0x25   : > { %273 = vperm.xlu0 %440, %v255_v3  }
  0x84   : > { %v260_v4 = vpop.xlane.xlu0 %259 }
  0x85   : > { %v261_v5 = vsub.f32 %v254_v1, %v260_v4 }
  0x87   : > { %v262_v6 = vmul.f32 1.442695, %v261_v5 }
  0x89   : > { %442 = vpow2.f32 %v262_v6 }
  0x8f   : > { %v443_v7 = vpop.eup %442 }
  0x90   : > { %v264_v8 = vsel %vm257_vm0, %v443_v7, 0.0 }
  0x91   : > { %265 = vadd.xlane.f32.xlu1 %v264_v8 }
  0x97   : > { %v274_v12 = vpop.permute.xlu0 %273 }
  0x98   : > { %vm275_vm1 = vcmp.eq.s32.totalorder %v271_v10, %v274_v12 }
  0x99   : > { %v283_v13 = vsel %vm275_vm1, %v441_v11, 0.0  ;;  %v276_v14 = vsel %vm275_vm1, %v254_v1, 0.0 }
  0x9a   : > { %v284_v15 = vsel %vm257_vm0, %v283_v13, 0.0  ;;  %v277_v16 = vsel %vm257_vm0, %v276_v14, 0.0 }
  0x9b   : > { %285 = vadd.xlane.f32.xlu2 %v284_v15  ;;  %278 = vadd.xlane.f32.xlu1 %v277_v16 }
 0x104   : > { %v266_v18 = vpop.xlane.xlu1 %265 }
 0x105   : > { %444 = vlog2.f32 %v266_v18 }
 0x10b   : > { %v445_v19 = vpop.eup %444 }
 0x10c   : > { %v268_v20 = vmul.f32 0.6931472, %v445_v19 }
 0x10e   : > { %v286_v22 = vpop.xlane.xlu2 %285  ;;  %v269_v23 = vadd.f32 %v268_v20, %v260_v4  ;;  %v279_v24 = vpop.xlane.xlu1 %278 }
 0x10f   : > { %v296_v25 = vsel %vm287_vm3, %v286_v22, 0.0 }
 0x110   : > { %v297_v26 = vadd.f32 %v296_v25, %v295_v21  ;;  %v289_v27 = vsub.f32 %v269_v23, %v279_v24 }
 0x112   : > { %298 = vst.msk [vmem:[%s246_s30] sm:$0xff] %vm251_vm2, %v297_v26  ;;  %v290_v29 = vmul.f32 %v289_v27, %v286_v22 }
 0x114   : > { %v291_v30 = vsel %vm287_vm3, %v290_v29, 0.0 }
 0x115   : > { %v292_v31 = vadd.f32 %v291_v30, %v288_v28 }
 0x117   : > { %294 = vst.msk [vmem:[%s242_s7] sm:$0xff] %vm251_vm2, %v292_v31 }
 0x118 PF: > { %s15_s17 = sadd.s32 1, %s468_s17   ;;  %s552_s15 = smov %s464_s16 }
 0x119   : > { %p12_p5 = scmp.ge.s32.totalorder %s15_s17, 4   ;;  %s553_s16 = smov %s555_s18 }
 0x11b   :  { %14 = sbr.rel (!%p12_p5) target bundleno = 2 (0x2), region = 81 }

</bundles_post_ra>
